<compile_context>
chip_gen: v7x
topology: tpu7x:2x2x1
jax: 0.10.0
libtpu: 0.0.40
codegen_flags: <defaults>
</compile_context>

<pallas_src>
import jax
import jax.numpy as jnp
from jax.experimental import pallas as pl
from jax.experimental.pallas import tpu as pltpu


# --------------------------- shared kernel body ---------------------------- #
def _cgtn_body(mu_ref, logsig_ref, eps_ref, w1lb_ref,
               w1n_ref, b1_ref, w2_ref, b2_ref, out_ref):
    # reparameterized noise: mu + exp(log_sigma) * eps   (f32 VPU/EUP)
    noise = mu_ref[...] + jnp.exp(logsig_ref[...]) * eps_ref[...]

    # layer 1: cat([noise, one_hot]) @ W1 decomposed as
    #   noise @ W1[:Z]      -> bf16 MXU matmul, f32 accumulation
    # + W1[Z:][label]       -> precomputed row-gather bias (no K=10 matmul)
    w1n = w1n_ref[...]
    h = jnp.dot(noise.astype(w1n.dtype), w1n,
                preferred_element_type=jnp.float32)
    h = h + w1lb_ref[...] + b1_ref[...]
    h = jnp.maximum(h, 0.0)                       # ReLU

    # layer 2 (bf16 MXU, f32 accumulation) + tanh(x)*2 epilogue (f32 EUP)
    w2 = w2_ref[...]
    o = jnp.dot(h.astype(w2.dtype), w2,
                preferred_element_type=jnp.float32) + b2_ref[...]
    out_ref[...] = jnp.tanh(o) * 2.0


def _cgtn_kernel_batched(mu_ref, logsig_ref, eps_ref, w1lb_ref,
                         w1n_ref, b1_ref, w2_ref, b2_ref, out_ref):
    _cgtn_body(mu_ref, logsig_ref, eps_ref, w1lb_ref,
               w1n_ref, b1_ref, w2_ref, b2_ref, out_ref)


def _cgtn_kernel_single(it_ref, mu_ref, logsig_ref, eps_ref, w1lb_ref, oh_ref,
                        w1n_ref, b1_ref, w2_ref, b2_ref,
                        out_ref, oh_out_ref):
    del it_ref  # only consumed by the BlockSpec index_maps
    _cgtn_body(mu_ref, logsig_ref, eps_ref, w1lb_ref,
               w1n_ref, b1_ref, w2_ref, b2_ref, out_ref)
    # return the one-hot labels through the kernel -> no XLA dynamic-slice glue
    oh_out_ref[...] = oh_ref[...]


# ------------------------------- wrappers ----------------------------------- #
def cgtn_forward_all(eps_all, params, img_shape):
    """All T inner iterations in one pallas_call (grid over T, weights resident)."""
    mu = params["curriculum_mu"]                    # (T, B, Z)
    T, B, Z = mu.shape
    H = params["b1"].shape[-1]
    OD = params["b2"].shape[-1]

    row = lambda shape: pl.BlockSpec(shape, lambda i: (i, 0, 0))
    fixed = lambda shape: pl.BlockSpec(shape, lambda i: (0, 0))

    flat = pl.pallas_call(
        _cgtn_kernel_batched,
        out_shape=jax.ShapeDtypeStruct((T, B, OD), jnp.float32),
        grid_spec=pltpu.PrefetchScalarGridSpec(
            num_scalar_prefetch=0,
            grid=(T,),
            in_specs=[
                row((None, B, Z)),      # curriculum_mu[it]
                row((None, B, Z)),      # curriculum_log_sigma[it]
                row((None, B, Z)),      # eps[it]  (fresh noise per iteration)
                row((None, B, H)),      # W1_label rows gathered by label
                fixed((Z, H)),          # W1 noise block   (VMEM-resident)
                fixed((1, H)),          # b1               (VMEM-resident)
                fixed((H, OD)),         # W2               (VMEM-resident)
                fixed((1, OD)),         # b2               (VMEM-resident)
            ],
            out_specs=row((None, B, OD)),
        ),
        compiler_params=pltpu.CompilerParams(
            # each `it` is independent -> shard across TensorCores (v7x)
            dimension_semantics=("parallel",)),
    )(mu, params["curriculum_log_sigma"], eps_all, params["w1_label_rows"],
      params["w1_noise"], params["b1"], params["w2"], params["b2"])

    C, Hh, Ww = img_shape
    return flat.reshape(T, B, C, Hh, Ww), params["curriculum_labels_one_hot"]


def cgtn_forward(it, eps, params, img_shape):
    """Single inner-iteration forward: exact GaussianCGTN.forward(it) semantics.

    `it` is scalar-prefetched; the curriculum row is DMA'd directly from the
    (T, ...) tables inside the pallas_call (no Python-side dynamic slices).
    """
    mu = params["curriculum_mu"]
    T, B, Z = mu.shape
    H = params["b1"].shape[-1]
    OD = params["b2"].shape[-1]

    row = lambda shape: pl.BlockSpec(shape, lambda i, it_ref: (it_ref[0], 0, 0))
    fixed = lambda shape: pl.BlockSpec(shape, lambda i, it_ref: (0,) * len(shape))

    it_arr = jnp.asarray([it], dtype=jnp.int32)

    flat, one_hot = pl.pallas_call(
        _cgtn_kernel_single,
        out_shape=(jax.ShapeDtypeStruct((B, OD), jnp.float32),
                   jax.ShapeDtypeStruct((B, 10), jnp.float32)),
        grid_spec=pltpu.PrefetchScalarGridSpec(
            num_scalar_prefetch=1,        # the `it` index lands in SMEM
            grid=(1,),
            in_specs=[
                row((None, B, Z)),        # curriculum_mu
                row((None, B, Z)),        # curriculum_log_sigma
                fixed((B, Z)),            # eps (already per-it)
                row((None, B, H)),        # gathered W1_label rows
                row((None, B, 10)),       # one-hot labels (pass-through)
                fixed((Z, H)),            # W1 noise block
                fixed((1, H)),            # b1
                fixed((H, OD)),           # W2
                fixed((1, OD)),           # b2
            ],
            out_specs=[fixed((B, OD)), fixed((B, 10))],
        ),
        compiler_params=pltpu.CompilerParams(
            dimension_semantics=("arbitrary",)),
    )(it_arr, mu, params["curriculum_log_sigma"], eps,
      params["w1_label_rows"], params["curriculum_labels_one_hot"],
      params["w1_noise"], params["b1"], params["w2"], params["b2"])

    C, Hh, Ww = img_shape
    return flat.reshape(B, C, Hh, Ww), one_hot


# ------------------------- deterministic parameter init --------------------- #
def init_params(key, num_inner_iterations, generator_batch_size, noise_size,
                hidden, img_shape):
    C, Hh, Ww = img_shape
    out_dim = C * Hh * Ww
    ks = jax.random.split(key, 4)

    # curriculum_labels = randint(10, (T, B)) ; one-hot buffer (non-trainable)
    labels = jax.random.randint(
        ks[0], (num_inner_iterations, generator_batch_size), 0, 10,
        dtype=jnp.int32)
    one_hot = jax.nn.one_hot(labels, 10, dtype=jnp.float32)

    # generator weights. W1 is stored split: the noise block and the label
    # block (matches cat([noise, one_hot], -1) @ W1 row order).  bf16 for the
    # MXU / DMA; accumulation stays f32 in-kernel.
    w1_noise = (0.05 * jax.random.normal(
        ks[1], (noise_size, hidden), jnp.float32)).astype(jnp.bfloat16)
    w1_label = (0.05 * jax.random.normal(
        ks[2], (10, hidden), jnp.float32)).astype(jnp.bfloat16)
    w2 = (0.05 * jax.random.normal(
        ks[3], (hidden, out_dim), jnp.float32)).astype(jnp.bfloat16)

    # one_hot @ W1_label == W1_label[label]: precompute the per-(it, row) bias
    # table once (labels are frozen buffers).  In a training loop this tiny
    # gather (T*B rows) is redone after each W1_label update.
    w1_label_rows = w1_label.astype(jnp.float32)[labels]      # (T, B, H) f32

    return {
        "curriculum_labels": labels,
        "curriculum_labels_one_hot": one_hot,
        "curriculum_mu": jnp.zeros(
            (num_inner_iterations, generator_batch_size, noise_size),
            jnp.float32),
        "curriculum_log_sigma": jnp.ones(
            (num_inner_iterations, generator_batch_size, noise_size),
            jnp.float32),
        "w1_noise": w1_noise,
        "w1_label": w1_label,
        "w1_label_rows": w1_label_rows,
        "b1": jnp.zeros((1, hidden), jnp.float32),
        "w2": w2,
        "b2": jnp.zeros((1, out_dim), jnp.float32),
    }


# ------------------------------ plain-JAX reference ------------------------- #
def _reference_forward_all(eps_all, params, img_shape):
    noise = (params["curriculum_mu"]
             + jnp.exp(params["curriculum_log_sigma"]) * eps_all)
    h = jnp.einsum("tbz,zh->tbh", noise.astype(jnp.bfloat16),
                   params["w1_noise"], preferred_element_type=jnp.float32)
    h = jnp.maximum(h + params["w1_label_rows"] + params["b1"], 0.0)
    o = jnp.einsum("tbh,hd->tbd", h.astype(jnp.bfloat16),
                   params["w2"], preferred_element_type=jnp.float32)
    out = jnp.tanh(o + params["b2"]) * 2.0
    T, B = noise.shape[:2]
    C, Hh, Ww = img_shape
    return out.reshape(T, B, C, Hh, Ww)


# ---------------------------------- demo ------------------------------------ #
if __name__ == "__main__":
    num_inner_iterations = 4
    generator_batch_size = 8          # multiple of the f32 sublane tile (8)
    noise_size = 32
    hidden = 128                      # lane-dense
    img_shape = (1, 16, 16)           # out_dim = 256, multiple of 128 lanes

    key = jax.random.PRNGKey(0)
    k_params, k_eps = jax.random.split(key)
    params = init_params(k_params, num_inner_iterations, generator_batch_size,
                         noise_size, hidden, img_shape)

    # fresh eps per inner iteration (torch.randn_like each forward)
    # TODO(synk): could be generated in-kernel with pltpu.prng_random_bits.
    eps_all = jax.random.normal(
        k_eps, (num_inner_iterations, generator_batch_size, noise_size),
        jnp.float32)

    # 1) all inner iterations in one pallas_call (weights stay VMEM-resident)
    imgs_all, labels_all = cgtn_forward_all(eps_all, params, img_shape)
    jax.block_until_ready(imgs_all)

    # 2) single-it forward (module semantics); `it` folded in via scalar prefetch
    it = 2
    imgs_it, labels_it = cgtn_forward(it, eps_all[it], params, img_shape)
    jax.block_until_ready(imgs_it)
    jax.block_until_ready(labels_it)

    C, Hh, Ww = img_shape
    assert imgs_all.shape == (num_inner_iterations, generator_batch_size, C, Hh, Ww)
    assert labels_all.shape == (num_inner_iterations, generator_batch_size, 10)
    assert imgs_it.shape == (generator_batch_size, C, Hh, Ww)
    assert labels_it.shape == (generator_batch_size, 10)
    assert bool(jnp.all(jnp.abs(imgs_all) <= 2.0))       # tanh(x)*2 range

    ref = _reference_forward_all(eps_all, params, img_shape)
    assert bool(jnp.allclose(imgs_all, ref, atol=2e-2, rtol=2e-2))
    assert bool(jnp.allclose(imgs_it, imgs_all[it], atol=2e-2, rtol=2e-2))
    assert bool(jnp.allclose(labels_it,
                             params["curriculum_labels_one_hot"][it]))

    print("KERNEL_OK")
</pallas_src>

<mosaic_0001>
module attributes {stable_mosaic.version = 11 : i64} {
  func.func @_cgtn_kernel_batched(%arg0: i32, %arg1: memref<1x8x32xf32, #tpu.memory_space<vmem>>, %arg2: memref<1x8x32xf32, #tpu.memory_space<vmem>>, %arg3: memref<1x8x32xf32, #tpu.memory_space<vmem>>, %arg4: memref<1x8x128xf32, #tpu.memory_space<vmem>>, %arg5: memref<32x128xbf16, #tpu.memory_space<vmem>>, %arg6: memref<1x128xf32, #tpu.memory_space<vmem>>, %arg7: memref<128x256xbf16, #tpu.memory_space<vmem>>, %arg8: memref<1x256xf32, #tpu.memory_space<vmem>>, %arg9: memref<1x8x256xf32, #tpu.memory_space<vmem>>) attributes {dimension_semantics = [#tpu.dimension_semantics<parallel>], iteration_bounds = array<i64: 4>, scalar_prefetch = 0 : i64, scratch_operands = 0 : i64, tpu.core_type = #tpu.core_type<tc>, window_params = [{transform_indices = @transform_0, window_bounds = array<i64: 1, 8, 32>}, {transform_indices = @transform_1, window_bounds = array<i64: 1, 8, 32>}, {transform_indices = @transform_2, window_bounds = array<i64: 1, 8, 32>}, {transform_indices = @transform_3, window_bounds = array<i64: 1, 8, 128>}, {pipeline_mode = #tpu.pipeline_mode<synchronous>, transform_indices = @transform_4, window_bounds = array<i64: 32, 128>}, {pipeline_mode = #tpu.pipeline_mode<synchronous>, transform_indices = @transform_5, window_bounds = array<i64: 1, 128>}, {pipeline_mode = #tpu.pipeline_mode<synchronous>, transform_indices = @transform_6, window_bounds = array<i64: 128, 256>}, {pipeline_mode = #tpu.pipeline_mode<synchronous>, transform_indices = @transform_7, window_bounds = array<i64: 1, 256>}, {transform_indices = @transform_8, window_bounds = array<i64: 1, 8, 256>}]} {
    %c0 = arith.constant 0 : index
    %c0_0 = arith.constant 0 : index
    %c0_1 = arith.constant 0 : index
    %0 = vector.load %arg1[%c0, %c0_0, %c0_1] : memref<1x8x32xf32, #tpu.memory_space<vmem>>, vector<1x8x32xf32>
    %1 = vector.shape_cast %0 : vector<1x8x32xf32> to vector<8x32xf32>
    %c0_2 = arith.constant 0 : index
    %c0_3 = arith.constant 0 : index
    %c0_4 = arith.constant 0 : index
    %2 = vector.load %arg2[%c0_2, %c0_3, %c0_4] : memref<1x8x32xf32, #tpu.memory_space<vmem>>, vector<1x8x32xf32>
    %3 = vector.shape_cast %2 : vector<1x8x32xf32> to vector<8x32xf32>
    %4 = math.exp %3 : vector<8x32xf32>
    %c0_5 = arith.constant 0 : index
    %c0_6 = arith.constant 0 : index
    %c0_7 = arith.constant 0 : index
    %5 = vector.load %arg3[%c0_5, %c0_6, %c0_7] : memref<1x8x32xf32, #tpu.memory_space<vmem>>, vector<1x8x32xf32>
    %6 = vector.shape_cast %5 : vector<1x8x32xf32> to vector<8x32xf32>
    %7 = arith.mulf %4, %6 : vector<8x32xf32>
    %8 = arith.addf %1, %7 : vector<8x32xf32>
    %c0_8 = arith.constant 0 : index
    %c0_9 = arith.constant 0 : index
    %9 = vector.load %arg5[%c0_8, %c0_9] : memref<32x128xbf16, #tpu.memory_space<vmem>>, vector<32x128xbf16>
    %10 = arith.truncf %8 : vector<8x32xf32> to vector<8x32xbf16>
    %cst = arith.constant dense<0.000000e+00> : vector<8x128xf32>
    %11 = tpu.matmul %10, %9, %cst {dimension_numbers = #tpu.dot_dimension_numbers<[1], [0], [0], [1], [0, 0, 1, 1], [], []>} : vector<8x32xbf16>, vector<32x128xbf16>, vector<8x128xf32> -> vector<8x128xf32>
    %c0_10 = arith.constant 0 : index
    %c0_11 = arith.constant 0 : index
    %c0_12 = arith.constant 0 : index
    %12 = vector.load %arg4[%c0_10, %c0_11, %c0_12] : memref<1x8x128xf32, #tpu.memory_space<vmem>>, vector<1x8x128xf32>
    %13 = vector.shape_cast %12 : vector<1x8x128xf32> to vector<8x128xf32>
    %14 = arith.addf %11, %13 : vector<8x128xf32>
    %c0_13 = arith.constant 0 : index
    %c0_14 = arith.constant 0 : index
    %15 = vector.load %arg6[%c0_13, %c0_14] : memref<1x128xf32, #tpu.memory_space<vmem>>, vector<1x128xf32>
    %16 = vector.broadcast %15 : vector<1x128xf32> to vector<8x128xf32>
    %17 = arith.addf %14, %16 : vector<8x128xf32>
    %cst_15 = arith.constant 0.000000e+00 : f32
    %18 = vector.broadcast %cst_15 : f32 to vector<8x128xf32>
    %19 = arith.maximumf %17, %18 : vector<8x128xf32>
    %c0_16 = arith.constant 0 : index
    %c0_17 = arith.constant 0 : index
    %20 = vector.load %arg7[%c0_16, %c0_17] : memref<128x256xbf16, #tpu.memory_space<vmem>>, vector<128x256xbf16>
    %21 = arith.truncf %19 : vector<8x128xf32> to vector<8x128xbf16>
    %cst_18 = arith.constant dense<0.000000e+00> : vector<8x256xf32>
    %22 = tpu.matmul %21, %20, %cst_18 {dimension_numbers = #tpu.dot_dimension_numbers<[1], [0], [0], [1], [0, 0, 1, 1], [], []>} : vector<8x128xbf16>, vector<128x256xbf16>, vector<8x256xf32> -> vector<8x256xf32>
    %c0_19 = arith.constant 0 : index
    %c0_20 = arith.constant 0 : index
    %23 = vector.load %arg8[%c0_19, %c0_20] : memref<1x256xf32, #tpu.memory_space<vmem>>, vector<1x256xf32>
    %24 = vector.broadcast %23 : vector<1x256xf32> to vector<8x256xf32>
    %25 = arith.addf %22, %24 : vector<8x256xf32>
    %26 = math.tanh %25 : vector<8x256xf32>
    %cst_21 = arith.constant 2.000000e+00 : f32
    %27 = vector.broadcast %cst_21 : f32 to vector<8x256xf32>
    %28 = arith.mulf %26, %27 : vector<8x256xf32>
    %c0_22 = arith.constant 0 : index
    %c0_23 = arith.constant 0 : index
    %c0_24 = arith.constant 0 : index
    %29 = vector.load %arg9[%c0_22, %c0_23, %c0_24] : memref<1x8x256xf32, #tpu.memory_space<vmem>>, vector<1x8x256xf32>
    %30 = vector.shape_cast %29 : vector<1x8x256xf32> to vector<8x256xf32>
    %31 = vector.shape_cast %28 : vector<8x256xf32> to vector<1x8x256xf32>
    tpu.vector_store %arg9[%c0_22, %c0_23, %c0_24], %31 {strides = array<i32>} : memref<1x8x256xf32, #tpu.memory_space<vmem>>, vector<1x8x256xf32>,
    return
  }
  func.func @transform_0(%arg0: i32) -> (i32, i32, i32) {
    %c0_i32 = arith.constant 0 : i32
    %c0_i32_0 = arith.constant 0 : i32
    %c0_i32_1 = arith.constant 0 : i32
    return %arg0, %c0_i32, %c0_i32_0 : i32, i32, i32
  }
  func.func @transform_1(%arg0: i32) -> (i32, i32, i32) {
    %c0_i32 = arith.constant 0 : i32
    %c0_i32_0 = arith.constant 0 : i32
    %c0_i32_1 = arith.constant 0 : i32
    return %arg0, %c0_i32, %c0_i32_0 : i32, i32, i32
  }
  func.func @transform_2(%arg0: i32) -> (i32, i32, i32) {
    %c0_i32 = arith.constant 0 : i32
    %c0_i32_0 = arith.constant 0 : i32
    %c0_i32_1 = arith.constant 0 : i32
    return %arg0, %c0_i32, %c0_i32_0 : i32, i32, i32
  }
  func.func @transform_3(%arg0: i32) -> (i32, i32, i32) {
    %c0_i32 = arith.constant 0 : i32
    %c0_i32_0 = arith.constant 0 : i32
    %c0_i32_1 = arith.constant 0 : i32
    return %arg0, %c0_i32, %c0_i32_0 : i32, i32, i32
  }
  func.func @transform_4(%arg0: i32) -> (i32, i32) {
    %c0_i32 = arith.constant 0 : i32
    %c0_i32_0 = arith.constant 0 : i32
    %c0_i32_1 = arith.constant 0 : i32
    return %c0_i32, %c0_i32_0 : i32, i32
  }
  func.func @transform_5(%arg0: i32) -> (i32, i32) {
    %c0_i32 = arith.constant 0 : i32
    %c0_i32_0 = arith.constant 0 : i32
    %c0_i32_1 = arith.constant 0 : i32
    return %c0_i32, %c0_i32_0 : i32, i32
  }
  func.func @transform_6(%arg0: i32) -> (i32, i32) {
    %c0_i32 = arith.constant 0 : i32
    %c0_i32_0 = arith.constant 0 : i32
    %c0_i32_1 = arith.constant 0 : i32
    return %c0_i32, %c0_i32_0 : i32, i32
  }
  func.func @transform_7(%arg0: i32) -> (i32, i32) {
    %c0_i32 = arith.constant 0 : i32
    %c0_i32_0 = arith.constant 0 : i32
    %c0_i32_1 = arith.constant 0 : i32
    return %c0_i32, %c0_i32_0 : i32, i32
  }
  func.func @transform_8(%arg0: i32) -> (i32, i32, i32) {
    %c0_i32 = arith.constant 0 : i32
    %c0_i32_0 = arith.constant 0 : i32
    %c0_i32_1 = arith.constant 0 : i32
    return %arg0, %c0_i32, %c0_i32_0 : i32, i32, i32
  }
}

</mosaic_0001>

<bundles_post_ra>
// kernel: tpu_custom_call.1
= control target key start
LH: loop header
LB: loop body
LE: loop exit
PB: predicated region body
PF: predicated region fallthrough
CT: control target
= control target key end

     0   :  { %s1705_s0 = inlined_call_operand.hbm [shape: f32[4,8,32], index: 0, kind: input, shape index: {}]   ;;  %s1706_s1 = inlined_call_operand.hbm [shape: f32[4,8,32], index: 1, kind: input, shape index: {}]   ;;  %s1707_s2 = inlined_call_operand.hbm [shape: f32[4,8,32], index: 2, kind: input, shape index: {}]   ;;  %s1708_s3 = inlined_call_operand.hbm [shape: f32[4,8,128], index: 3, kind: input, shape index: {}]   ;;  %s1709_s4 = inlined_call_operand.hbm [shape: bf16[32,128], index: 4, kind: input, shape index: {}]   ;;  %s1710_s5 = inlined_call_operand.vmem [shape: f32[1,128], index: 5, kind: input, shape index: {}]   ;;  %s1711_s6 = inlined_call_operand.hbm [shape: bf16[128,256], index: 6, kind: input, shape index: {}]   ;;  %s1712_s7 = inlined_call_operand.vmem [shape: f32[1,256], index: 7, kind: input, shape index: {}]   ;;  %s1713_s8 = inlined_call_operand.hbm [shape: f32[4,8,256], index: 8, kind: output, shape index: {}]  }
   0x1   :  { %1732 = sst [smem:[#allocation24_spill]] %s1705_s0 }
   0x2   :  { %1733 = sst [smem:[#allocation25_spill]] %s1706_s1 }
   0x3   :  { %1734 = sst [smem:[#allocation26_spill]] %s1709_s4 }
   0x4   :  { %1735 = sst [smem:[#allocation27_spill]] %s1711_s6 }
   0x5   :  { %1736 = sst [smem:[#allocation28_spill]] %s1713_s8 }
   0x6   :  { %13 = vsyncpa [#allocation3], 0 }
   0x7   :  { %15 = vsyncpa [#allocation3 + $0x1], 0 }
   0x8   :  { %16 = vsyncpa [#allocation6], 0 }
   0x9   :  { %18 = vsyncpa [#allocation6 + $0x1], 0 }
   0xa   :  { %19 = vsyncpa [#allocation9], 0 }
   0xb   :  { %21 = vsyncpa [#allocation9 + $0x1], 0 }
   0xc   :  { %22 = vsyncpa [#allocation12], 0 }
   0xd   :  { %23 = vsyncpa [#allocation4], 0 }
   0xe   :  { %25 = vsyncpa [#allocation4 + $0x1], 0  ;;  %s1361_s27 = smov 0   ;;  %s1363_s28 = smov 0  }
   0xf   :  { %s1365_s29 = smov 0   ;;  %s1367_s30 = smov 0  }
  0x10 LB: > { %1737 = sst [smem:[#allocation20_spill]] %s1288_s27  ;;  %s1382_s9 = sadd.s32 4294967295, %s1300_s30   ;;  %s1300_s30 = sphi %s1367_s30, %s1773_s30   ;;  %s1296_s29 = sphi %s1365_s29, %s1777_s29   ;;  %s1292_s28 = sphi %s1363_s28, %s1776_s28   ;;  %s1288_s27 = sphi %s1361_s27, %s1775_s27  }
  0x11   : > { %s863_s10 = sadd.s32 4294967294, %s1300_s30   ;;  %p51_p0 = scmp.ne.s32.totalorder %s1292_s28, %s1288_s27 }
  0x12   : > { %p1714_p1 = scmp.eq.s32.totalorder %s1382_s9, 0  ;;  %p243_p3 = scmp.eq.s32.totalorder %s863_s10, 3 }
  0x13   : > { %p864_p5 = scmp.ge.s32.totalorder %s1300_s30, 1  ;;  %p250_p7 = scmp.lt.s32.totalorder %s1300_s30, 5 }
  0x14   : > { %p1391_p4 = por %p1714_p1, %p51_p0  ;;  %p1396_p6 = por %p243_p3, %p51_p0 }
  0x15   : > { %p1401_p8 = pnand %p864_p5, %p250_p7  ;;  %s1302_s14 = smov [#allocation10]  }
  0x16   : > { %s1738_s11 = scalar_select %p1391_p4, 1, 0 }
  0x17   : > { %s1739_s12 = scalar_select %p1396_p6, 1, 0 }
  0x18   : > { %s1741_s13 = scalar_select %p1401_p8, 1, 0 }
  0x19   : > { %1740 = sst [smem:[#allocation21_spill]] %s1739_s12  ;;  %s262_s15 = sshll.u32 %s1302_s14, 4  ;;  %s263_s15 = int_to_ptr.vmem [resolvable:$true] %s262_s15 }
  0x1a   : > { %p939_p9 = pneg %p1401_p8  ;;  %s1414_s17 = sadd.s32 1, %s1300_s30  }
  0x1b   : > { %1743 = sst [smem:[#allocation22_spill]] %s1414_s17  ;;  %s38_s18 = sadd.s32 1, %s1296_s29 }
  0x1c   : > { %p1409_p10 = pnand %p939_p9, %p1714_p1  ;;  %s35_s19 = ssub.s32 %s1300_s30, %s1414_s17 }
  0x1d   : > { %s1744_s4 = sld [smem:[#allocation26_spill]] }
  0x1e   : > { %s1742_s16 = scalar_select %p1409_p10, 1, 0 }
  0x1f   : > { %p1722_p12 = pneg %p1409_p10 }
  0x23   : > { %s1042_s22 = scalar_lea.hbm %s1744_s4, 256 }
  0x24   : > { %p1043_p11 = scmp.ne.s32.totalorder %s1744_s4, %s1042_s22  ;;  %p1049_p3 = scmp.lt.u32.totalorder %s1042_s22, %s1744_s4 }
  0x26   : > { %p1045_p13 = pnand %p1722_p12, %p1043_p11 }
  0x28   : > { %p1046_p0 = pneg %p1045_p13 }
  0x2a   : > { %p1051_p5 = pnand %p1049_p3, %p1046_p0 }
  0x2c   : > { %1054 = shalt.err (!%p1051_p5)
}
  0x2d   : > { %s1055_s10 = scalar_lea.vmem %s263_s15, 256  ;;  %p1063_p2 = scmp.lt.s32.totalorder %s263_s15, %s263_s15 }
  0x2e   : > { %p1056_p7 = scmp.ne.s32.totalorder %s263_s15, %s1055_s10  ;;  %p1064_p6 = scmp.lt.s32.totalorder %s1055_s10, %s1055_s10 }
  0x30   : > { %p1058_p9 = pnand %p1056_p7, %p1722_p12  ;;  %p1065_p4 = por %p1064_p6, %p1063_p2 }
  0x32   : > { %p1059_p1 = pneg %p1058_p9 }
  0x34   : > { %p1066_p8 = pnand %p1065_p4, %p1059_p1 }
  0x36   : > { %1069 = shalt.err (!%p1066_p8)
}
  0x37   : > { %s1303_s14 = smov 64   ;;  %s1304_s20 = smov 4  }
  0x38   : > { %942 = dma.hbm_to_vmem [thread:$0]  (!%p1409_p10), %s1744_s4, 256, %s263_s15, [#allocation9], %s1303_s14, %s1303_s14, %s1304_s20  }
  0x39   : > { %p36_p1 = scmp.eq.s32.totalorder %s35_s19, 0  ;;  %p45_p2 = scmp.ne.s32.totalorder %s1296_s29, %s1292_s28 }
  0x3a   : > { %p46_p4 = scmp.eq.s32.totalorder %s1300_s30, 0  ;;  %p965_p6 = scmp.lt.s32.totalorder %s1300_s30, 4 }
  0x3b   : > { %s1446_s23 = scalar_select %p36_p1, %s1296_s29, %s38_s18  }
  0x3c   : > { %p47_p8 = por %p46_p4, %p45_p2  ;;  %p1746_p11 = scmp.eq.s32.totalorder %s1382_s9, 3 }
  0x3d   : > { %1745 = sst [smem:[#allocation23_spill]] %s1446_s23  ;;  %s1717_s25 = sand.u32 1, %s1296_s29  }
  0x3e   : > { %p1450_p13 = por %p1746_p11, %p45_p2  ;;  %s1456_s26 = sshll.u32 %s1300_s30, 7 }
  0x3f   : > { %s1460_s10 = sshll.u32 %s1717_s25, 3  ;;  %p1462_p0 = pnand %p965_p6, %p47_p8 }
  0x40   : > { %s1747_s24 = scalar_select %p1450_p13, 1, 0 }
  0x41   : > { %s1748_s15 = scalar_select %p1462_p0, 1, 0 }
  0x42   : > { %s1721_s18 = sand.u32 1, %s1300_s30   ;;  %s1749_s1 = sld [smem:[#allocation25_spill]] }
  0x43   : > { %s317_s21 = scalar_lea.vmem [#allocation5], %s1460_s10  ;;  %s1478_s25 = scalar_lea.sflag [#allocation6], %s1721_s18 }
  0x44   : > { %s324_s22 = sshll.u32 %s317_s21, 4  ;;  %p1484_p5 = pneg %p1462_p0  ;;  %s1474_s22 = int_to_ptr.vmem [resolvable:$true] %s324_s22 }
  0x46   : > { %s1750_s23 = scalar_select %p1484_p5, 1, 0 }
  0x48   : > { %s1471_s20 = scalar_lea.hbm %s1749_s1, %s1456_s26  ;;  %s1075_s21 = scalar_lea.hbm %s1749_s1, 512 }
  0x49   : > { %s1070_s4 = scalar_lea.hbm %s1471_s20, 128  ;;  %p1076_p1 = scmp.lt.u32.totalorder %s1471_s20, %s1749_s1 }
  0x4a   : > { %p1071_p3 = scmp.ne.s32.totalorder %s1471_s20, %s1070_s4  ;;  %p1077_p2 = scmp.lt.u32.totalorder %s1075_s21, %s1070_s4 }
  0x4b   : > { %p1079_p6 = scmp.lt.u32.totalorder %s1070_s4, %s1471_s20 }
  0x4c   : > { %p1073_p7 = pnand %p1484_p5, %p1071_p3  ;;  %p1078_p4 = por %p1077_p2, %p1076_p1 }
  0x4e   : > { %p1074_p9 = pneg %p1073_p7  ;;  %p1080_p8 = por %p1079_p6, %p1078_p4 }
  0x50   : > { %p1081_p11 = pnand %p1080_p8, %p1074_p9 }
  0x52   : > { %1084 = shalt.err (!%p1081_p11)
}
  0x53   : > { %s1085_s18 = scalar_lea.vmem %s1474_s22, 128  ;;  %s1305_s19 = smov [#allocation5]  }
  0x54   : > { %p1086_p3 = scmp.ne.s32.totalorder %s1474_s22, %s1085_s18  ;;  %s1090_s14 = sshll.u32 %s1305_s19, 4  ;;  %s1091_s14 = int_to_ptr.vmem [resolvable:$false] %s1090_s14 }
  0x55   : > { %s1092_s12 = scalar_lea.vmem %s1091_s14, 256  ;;  %p1093_p13 = scmp.lt.s32.totalorder %s1474_s22, %s1091_s14 }
  0x56   : > { %p1088_p7 = pnand %p1086_p3, %p1484_p5  ;;  %p1094_p10 = scmp.lt.s32.totalorder %s1092_s12, %s1085_s18 }
  0x58   : > { %p1089_p12 = pneg %p1088_p7  ;;  %p1095_p1 = por %p1094_p10, %p1093_p13 }
  0x5a   : > { %p1096_p2 = pnand %p1095_p1, %p1089_p12 }
  0x5c   : > { %1099 = shalt.err (!%p1096_p2)
}
  0x5d   : > { %952 = dma.hbm_to_vmem [thread:$0]  (!%p1462_p0), %s1471_s20, 128, %s1474_s22, %s1478_s25  }
  0x5e   : > { %s1306_s4 = smov [#allocation11]   ;;  %s1751_s6 = sld [smem:[#allocation27_spill]] }
  0x5f   : > { %s278_s17 = sshll.u32 %s1306_s4, 4  ;;  %p1752_p12 = scmp.ne.s32.totalorder %s1742_s16, 0  ;;  %s279_s17 = int_to_ptr.vmem [resolvable:$true] %s278_s17 }
  0x61   : > { %p1753_p13 = pneg %p1752_p12 }
  0x64   : > { %s1100_s19 = scalar_lea.hbm %s1751_s6, 2048 }
  0x65   : > { %p1101_p10 = scmp.ne.s32.totalorder %s1751_s6, %s1100_s19  ;;  %p1107_p6 = scmp.lt.u32.totalorder %s1100_s19, %s1751_s6 }
  0x67   : > { %p1103_p9 = pnand %p1101_p10, %p1753_p13 }
  0x69   : > { %p1104_p4 = pneg %p1103_p9 }
  0x6b   : > { %p1109_p8 = pnand %p1107_p6, %p1104_p4 }
  0x6d   : > { %1112 = shalt.err (!%p1109_p8)
}
  0x6e   : > { %s1113_s20 = scalar_lea.vmem %s279_s17, 2048  ;;  %p1754_p3 = pmov %p1753_p13 }
  0x6f   : > { %p1114_p11 = scmp.ne.s32.totalorder %s279_s17, %s1113_s20  ;;  %p1121_p2 = scmp.lt.s32.totalorder %s279_s17, %s279_s17 }
  0x70   : > { %p1122_p0 = scmp.lt.s32.totalorder %s1113_s20, %s1113_s20 }
  0x71   : > { %p1116_p7 = pnand %p1114_p11, %p1754_p3 }
  0x72   : > { %p1123_p5 = por %p1122_p0, %p1121_p2 }
  0x73   : > { %p1117_p1 = pneg %p1116_p7 }
  0x75   : > { %p1124_p10 = pnand %p1123_p5, %p1117_p1 }
  0x77   : > { %1127 = shalt.err (!%p1124_p10)
}
  0x78   : > { %s1307_s1 = smov 128   ;;  %s1308_s27 = smov 8  }
  0x79   : > { %945 = dma.hbm_to_vmem [thread:$0]  (!%p1752_p12), %s1751_s6, 2048, %s279_s17, [#allocation12], %s1307_s1, %s1307_s1, %s1308_s27  }
  0x7a   : > { %s1755_s0 = sld [smem:[#allocation24_spill]]  ;;  %s299_s18 = scalar_lea.vmem [#allocation2], %s1460_s10 }
  0x7b   : > { %s306_s12 = sshll.u32 %s299_s18, 4  ;;  %s1541_s16 = scalar_lea.hbm %s1707_s2, %s1456_s26  ;;  %s1535_s12 = int_to_ptr.vmem [resolvable:$true] %s306_s12 }
  0x7c   : > { %s1756_s22 = sand.u32 1, %s1296_s29   ;;  %p1757_p5 = scmp.ne.s32.totalorder %s1750_s23, 0 }
  0x7d   : > { %s296_s17 = scalar_lea.sflag [#allocation3], %s1756_s22 }
  0x80   : > { %s1532_s14 = scalar_lea.hbm %s1755_s0, %s1456_s26  ;;  %s1133_s21 = scalar_lea.hbm %s1755_s0, 512 }
  0x81   : > { %s1128_s1 = scalar_lea.hbm %s1532_s14, 128  ;;  %p1134_p9 = scmp.lt.u32.totalorder %s1532_s14, %s1755_s0 }
  0x82   : > { %p1129_p0 = scmp.ne.s32.totalorder %s1532_s14, %s1128_s1  ;;  %p1135_p4 = scmp.lt.u32.totalorder %s1133_s21, %s1128_s1 }
  0x83   : > { %p1137_p8 = scmp.lt.u32.totalorder %s1128_s1, %s1532_s14 }
  0x84   : > { %p1131_p12 = pnand %p1129_p0, %p1757_p5  ;;  %p1136_p6 = por %p1135_p4, %p1134_p9 }
  0x86   : > { %p1132_p13 = pneg %p1131_p12  ;;  %p1138_p11 = por %p1137_p8, %p1136_p6 }
  0x88   : > { %p1139_p3 = pnand %p1138_p11, %p1132_p13 }
  0x8a   : > { %1142 = shalt.err (!%p1139_p3)
}
  0x8b   : > { %s1143_s8 = scalar_lea.vmem %s1535_s12, 128  ;;  %s1309_s20 = smov [#allocation2]  }
  0x8c   : > { %p1144_p7 = scmp.ne.s32.totalorder %s1535_s12, %s1143_s8  ;;  %s1148_s22 = sshll.u32 %s1309_s20, 4  ;;  %s1149_s22 = int_to_ptr.vmem [resolvable:$false] %s1148_s22 }
  0x8d   : > { %s1150_s27 = scalar_lea.vmem %s1149_s22, 256  ;;  %p1151_p10 = scmp.lt.s32.totalorder %s1535_s12, %s1149_s22 }
  0x8e   : > { %p1146_p1 = pnand %p1144_p7, %p1757_p5  ;;  %p1152_p0 = scmp.lt.s32.totalorder %s1150_s27, %s1143_s8 }
  0x90   : > { %p1147_p2 = pneg %p1146_p1  ;;  %p1153_p12 = por %p1152_p0, %p1151_p10 }
  0x92   : > { %p1154_p9 = pnand %p1153_p12, %p1147_p2 }
  0x94   : > { %1157 = shalt.err (!%p1154_p9)
}
  0x95   : > { %p1758_p13 = scmp.ne.s32.totalorder %s1748_s15, 0  ;;  %s335_s1 = scalar_lea.vmem [#allocation7], %s1460_s10 }
  0x96   : > { %s342_s4 = sshll.u32 %s335_s1, 4  ;;  %s1571_s18 = scalar_lea.hbm %s1708_s3, %s1456_s26  ;;  %s343_s4 = int_to_ptr.vmem [resolvable:$true] %s342_s4 }
  0x97   : > { %949 = dma.hbm_to_vmem [thread:$0]  (!%p1758_p13), %s1532_s14, 128, %s1535_s12, %s296_s17  }
  0x98   : > { %s1158_s8 = scalar_lea.hbm %s1541_s16, 128  ;;  %s1163_s27 = scalar_lea.hbm %s1707_s2, 512 }
  0x99   : > { %p1159_p4 = scmp.ne.s32.totalorder %s1541_s16, %s1158_s8  ;;  %p1164_p11 = scmp.lt.u32.totalorder %s1541_s16, %s1707_s2 }
  0x9a   : > { %p1165_p3 = scmp.lt.u32.totalorder %s1163_s27, %s1158_s8  ;;  %p1167_p1 = scmp.lt.u32.totalorder %s1158_s8, %s1541_s16 }
  0x9b   : > { %p1161_p6 = pnand %p1159_p4, %p1757_p5 }
  0x9c   : > { %p1166_p7 = por %p1165_p3, %p1164_p11 }
  0x9d   : > { %p1162_p8 = pneg %p1161_p6 }
  0x9e   : > { %p1168_p2 = por %p1167_p1, %p1166_p7 }
  0xa0   : > { %p1169_p10 = pnand %p1168_p2, %p1162_p8 }
  0xa2   : > { %1172 = shalt.err (!%p1169_p10)
}
  0xa3   : > { %s1173_s26 = scalar_lea.vmem %s343_s4, 128  ;;  %s1310_s14 = smov [#allocation7]  }
  0xa4   : > { %p1174_p0 = scmp.ne.s32.totalorder %s343_s4, %s1173_s26  ;;  %s1178_s12 = sshll.u32 %s1310_s14, 4  ;;  %s1179_s12 = int_to_ptr.vmem [resolvable:$false] %s1178_s12 }
  0xa5   : > { %s1180_s17 = scalar_lea.vmem %s1179_s12, 256  ;;  %p1181_p4 = scmp.lt.s32.totalorder %s343_s4, %s1179_s12 }
  0xa6   : > { %p1176_p12 = pnand %p1174_p0, %p1757_p5  ;;  %p1182_p6 = scmp.lt.s32.totalorder %s1180_s17, %s1173_s26 }
  0xa8   : > { %p1177_p9 = pneg %p1176_p12  ;;  %p1183_p13 = por %p1182_p6, %p1181_p4 }
  0xaa   : > { %p1184_p3 = pnand %p1183_p13, %p1177_p9 }
  0xac   : > { %1187 = shalt.err (!%p1184_p3)
}
  0xad   : > { %p1759_p11 = scmp.ne.s32.totalorder %s1748_s15, 0  ;;  %s353_s0 = scalar_lea.vmem [#allocation8], %s1460_s10 }
  0xae   : > { %s360_s6 = sshll.u32 %s353_s0, 4  ;;  %s1760_s1 = sand.u32 1, %s1300_s30   ;;  %s361_s6 = int_to_ptr.vmem [resolvable:$true] %s360_s6 }
  0xaf   : > { %955 = dma.hbm_to_vmem [thread:$0]  (!%p1759_p11), %s1541_s16, 128, %s343_s4, %s1478_s25  }
  0xb0   : > { %s350_s21 = scalar_lea.sflag [#allocation9], %s1760_s1  ;;  %s1188_s19 = scalar_lea.hbm %s1571_s18, 128 }
  0xb1   : > { %p1189_p13 = scmp.ne.s32.totalorder %s1571_s18, %s1188_s19  ;;  %s1193_s22 = scalar_lea.hbm %s1708_s3, 512 }
  0xb2   : > { %p1194_p1 = scmp.lt.u32.totalorder %s1571_s18, %s1708_s3  ;;  %p1195_p2 = scmp.lt.u32.totalorder %s1193_s22, %s1188_s19 }
  0xb3   : > { %p1191_p8 = pnand %p1189_p13, %p1757_p5  ;;  %p1197_p0 = scmp.lt.u32.totalorder %s1188_s19, %s1571_s18 }
  0xb4   : > { %p1196_p10 = por %p1195_p2, %p1194_p1 }
  0xb5   : > { %p1192_p7 = pneg %p1191_p8 }
  0xb6   : > { %p1198_p12 = por %p1197_p0, %p1196_p10 }
  0xb8   : > { %p1199_p9 = pnand %p1198_p12, %p1192_p7 }
  0xba   : > { %1202 = shalt.err (!%p1199_p9)
}
  0xbb   : > { %s1203_s25 = scalar_lea.vmem %s361_s6, 128  ;;  %s1311_s10 = smov [#allocation8]  }
  0xbc   : > { %p1204_p4 = scmp.ne.s32.totalorder %s361_s6, %s1203_s25  ;;  %s1208_s16 = sshll.u32 %s1311_s10, 4  ;;  %s1209_s16 = int_to_ptr.vmem [resolvable:$false] %s1208_s16 }
  0xbd   : > { %s1210_s4 = scalar_lea.vmem %s1209_s16, 256  ;;  %p1211_p13 = scmp.lt.s32.totalorder %s361_s6, %s1209_s16 }
  0xbe   : > { %p1206_p6 = pnand %p1204_p4, %p1757_p5  ;;  %p1212_p8 = scmp.lt.s32.totalorder %s1210_s4, %s1203_s25 }
  0xc0   : > { %p1207_p3 = pneg %p1206_p6  ;;  %p1213_p11 = por %p1212_p8, %p1211_p13 }
  0xc2   : > { %p1214_p1 = pnand %p1213_p11, %p1207_p3 }
  0xc4   : > { %1217 = shalt.err (!%p1214_p1)
}
  0xc5   : > { %p1761_p2 = scmp.ne.s32.totalorder %s1748_s15, 0  ;;  %p1762_p7 = scmp.ne.s32.totalorder %s1741_s13, 0 }
  0xc6   : > { %s1614_s23 = sand.u32 (!%p1762_p7), 1, %s1292_s28   ;;  %p1763_p5 = scmp.ne.s32.totalorder (!%p1762_p7), %s1738_s11, 0 }
  0xc7   : > { %958 = dma.hbm_to_vmem [thread:$0]  (!%p1761_p2), %s1571_s18, 128, %s361_s6, %s350_s21  }
  0xc8   : > { %369 = sbr.rel (%p1762_p7) target bundleno = 703 (0x2bf), region = 52  ;;  %s1617_s14 = sshll.u32 (!%p1762_p7), %s1614_s23, 3 }
  0xc9   : > { %s372_s12 = scalar_lea.sflag (!%p1762_p7), [#allocation3], %s1614_s23  ;;  %s375_s17 = scalar_lea.vmem (!%p1762_p7), [#allocation2], %s1617_s14 }
  0xcf   : > { %1263 = dma.done.wait (%p1763_p5), %s372_s12, 128  }
  0xd0   : > { %1265 = vsyncadd (%p1763_p5), %s372_s12, 4294967168  ;;  %s380_s13 = sand.u32 1, %s1382_s9   ;;  %s384_s18 = scalar_lea.vmem [#allocation5], %s1617_s14 }
  0xd1   : > { %s381_s15 = scalar_lea.sflag [#allocation6], %s380_s13 }
  0xd2   : > { %1267 = dma.done.wait (%p1763_p5), %s381_s15, 256  }
  0xd3   : > { %1269 = vsyncadd (%p1763_p5), %s381_s15, 4294967040  ;;  %s393_s0 = scalar_lea.vmem [#allocation7], %s1617_s14  ;;  %s399_s6 = scalar_lea.sflag [#allocation9], %s380_s13 }
  0xd4   : > { %s402_s1 = scalar_lea.vmem [#allocation8], %s1617_s14 }
  0xd5   : > { %1271 = dma.done.wait (%p1763_p5), %s399_s6, 128  }
  0xd6   : > { %1273 = vsyncadd (%p1763_p5), %s399_s6, 4294967168  ;;  %p1764_p11 = scmp.eq.s32.totalorder %s1382_s9, 0 }
  0xd8   : > { %1275 = dma.done.wait (%p1764_p11), [#allocation9], 256   ;;  %p1765_p10 = pmov %p1764_p11 }
  0xda   : > { %1277 = vsyncadd (%p1765_p10), [#allocation9], 4294967040  ;;  %p1766_p0 = pmov %p1765_p10 }
  0xdc   : > { %1279 = dma.done.wait (%p1766_p0), [#allocation12], 2048   ;;  %p1767_p12 = pmov %p1766_p0 }
  0xdd   : > { %v1312_v0 = vmov 0.0   ;;  %vm1313_vm0 = vmmov 0   ;;  %v1010_v1 = vld [vmem:[#allocation10] sm:$0xff]   ;;  %v1011_v2 = vld [vmem:[#allocation10 + $0x8] sm:$0xff]   ;;  %v460_v3 = vld [vmem:[%s384_s18] sm:$0xff]  ;;  %vm484_vm1 = vcmask 261120   ;;  %v556_v38 = vlaneseq }
  0xde   : > { %1281 = vsyncadd (%p1767_p12), [#allocation12], 4294965248  ;;  %913 = vmatprep.subr.bf16.mxu0 %v1312_v0  ;;  %917 = vmatprep.mubr.msk.bf16.mxu0 %vm1313_vm0, %v1312_v0  ;;  %v461_v4 = vmul.f32 1.442695, %v460_v3  ;;  %v1012_v5 = vld [vmem:[#allocation11 + $0x4] ss:$8 sps:$4 sm:$0xff]  }
  0xdf   : > { %914 = vmatpush3.bf16.msra.mxu0 %v1010_v1  ;;  %v1014_v6 = vld [vmem:[#allocation11] ss:$8 sps:$4 sm:$0xff]   ;;  %646 = vmatprep.subr.bf16.mxu1 %v1012_v5  ;;  %v1015_v7 = vld [vmem:[#allocation11 + $0x14] ss:$8 sps:$4 sm:$0xff]   ;;  %v1017_v8 = vld [vmem:[#allocation11 + $0x10] ss:$8 sps:$4 sm:$0xff]  }
  0xe0   : > { %915 = vmatprep.subr.bf16.mxu0 %v1312_v0  ;;  %1036 = vpow2.f32 %v461_v4  ;;  %647 = vmatpush1.bf16.msra.mxu1 %v1014_v6  ;;  %v1018_v9 = vld [vmem:[#allocation11 + $0x24] ss:$8 sps:$4 sm:$0xff]   ;;  %v1020_v10 = vld [vmem:[#allocation11 + $0x20] ss:$8 sps:$4 sm:$0xff]   ;;  %v1021_v11 = vld [vmem:[#allocation11 + $0x34] ss:$8 sps:$4 sm:$0xff]  }
  0xe1   : > { %648 = vmatprep.subr.bf16.mxu1 %v1015_v7  ;;  %v463_v12 = vld [vmem:[%s393_s0] sm:$0xff]  ;;  %v1024_v16 = vld [vmem:[#allocation11 + $0x44] ss:$8 sps:$4 sm:$0xff]   ;;  %v1026_v19 = vld [vmem:[#allocation11 + $0x40] ss:$8 sps:$4 sm:$0xff]   ;;  %v1314_v27 = vmov 0  }
  0xe2   : > { %v1023_v13 = vld [vmem:[#allocation11 + $0x30] ss:$8 sps:$4 sm:$0xff]   ;;  %v1027_v20 = vld [vmem:[#allocation11 + $0x54] ss:$8 sps:$4 sm:$0xff]   ;;  %v1030_v23 = vld [vmem:[#allocation11 + $0x64] ss:$8 sps:$4 sm:$0xff]   ;;  %678 = vmatprep.mubr.bf16.mxu1 %v1314_v27 }
  0xe3   : > { %916 = vmatpush3.bf16.msra.mxu0 %v1011_v2  ;;  %v459_v15 = vld [vmem:[%s375_s17] sm:$0xff]  ;;  %v1032_v24 = vld [vmem:[#allocation11 + $0x60] ss:$8 sps:$4 sm:$0xff]   ;;  %v557_v39 = vshrl.u32 %v556_v38, 7  ;;  %s883_s20 = sshll.u32 %s1614_s23, 4  ;;  %s909_s22 = sshll.u32 %s1382_s9, 8 }
  0xe4   : > { %649 = vmatpush1.bf16.msra.mxu1 %v1017_v8  ;;  %v1029_v22 = vld [vmem:[#allocation11 + $0x50] ss:$8 sps:$4 sm:$0xff]   ;;  %v1033_v25 = vld [vmem:[#allocation11 + $0x74] ss:$8 sps:$4 sm:$0xff]   ;;  %v471_v28 = vld [vmem:[%s402_s1] sm:$0xff]  ;;  %s457_s27 = scalar_lea.vmem [#allocation13], %s883_s20 }
  0xe5   : > { %650 = vmatprep.subr.bf16.mxu1 %v1018_v9  ;;  %v1035_v26 = vld [vmem:[#allocation11 + $0x70] ss:$8 sps:$4 sm:$0xff]   ;;  %v558_v40 = vsub.s32 0, %v557_v39  ;;  %v562_v42 = vsub.s32 1, %v557_v39  ;;  %s708_s26 = sshll.u32 %s457_s27, 4  ;;  %s1768_s16 = sld [smem:[#allocation28_spill]]  ;;  %s1664_s26 = int_to_ptr.vmem [resolvable:$true] %s708_s26 }
  0xe6   : > { %v887_v30 = vld [vmem:[%s1710_s5] ss:$0 sm:$0xff]  ;;  %s694_s14 = scalar_lea.sflag [#allocation4], %s1614_s23  ;;  %s1218_s9 = scalar_lea.vmem %s1664_s26, 256 }
  0xe7   : > { %v554_v41 = vld [vmem:[%s1712_s7] sm:$0x3]  ;;  %p1219_p9 = scmp.ne.s32.totalorder %s1664_s26, %s1218_s9  ;;  %p1769_p4 = scmp.ne.s32.totalorder %s1747_s24, 0 }
  0xe8   : > { %651 = vmatpush1.bf16.msra.mxu1 %v1020_v10  ;;  %v559_v43 = vrot.slane %v554_v41, %v558_v40  ;;  %v563_v44 = vrot.slane %v554_v41, %v562_v42  ;;  %s1315_s12 = smov [#allocation13]  }
  0xe9   : > { %652 = vmatprep.subr.bf16.mxu1 %v1021_v11  ;;  %p1220_p6 = pnand %p1219_p9, %p1769_p4  ;;  %s1222_s17 = sshll.u32 %s1315_s12, 4  ;;  %s1223_s17 = int_to_ptr.vmem [resolvable:$false] %s1222_s17 }
  0xea   : > { %v1037_v14 = vpop.eup %1036  ;;  %s1224_s13 = scalar_lea.vmem %s1223_s17, 512  ;;  %p1225_p13 = scmp.lt.s32.totalorder %s1664_s26, %s1223_s17 }
  0xeb   : > { %v464_v17 = vmul.f32 %v1037_v14, %v463_v12  ;;  %s1662_s4 = scalar_lea.hbm %s1768_s16, %s909_s22  ;;  %p1221_p3 = pneg %p1220_p6 }
  0xec   : > { %653 = vmatpush1.bf16.msra.mxu1 %v1023_v13  ;;  %p1226_p8 = scmp.lt.s32.totalorder %s1224_s13, %s1218_s9 }
  0xed   : > { %v465_v18 = vadd.f32 %v464_v17, %v459_v15  ;;  %654 = vmatprep.subr.bf16.mxu1 %v1024_v16 }
  0xee   : > { %p1227_p1 = por %p1226_p8, %p1225_p13 }
  0xef   : > { %v470_v21 = vpack.c.bf16 %v465_v18, %v465_v18 }
  0xf0   : > { %655 = vmatpush1.bf16.msra.mxu1 %v1026_v19  ;;  %p1228_p2 = pnand %p1227_p1, %p1221_p3 }
  0xf1   : > { %918 = vmatmul.mubr.msk.bf16.vlgmr.msra.gmra.mrb[0].mxu0 %vm484_vm1, %v470_v21  ;;  %656 = vmatprep.subr.bf16.mxu1 %v1027_v20 }
  0xf4   : > { %657 = vmatpush1.bf16.msra.mxu1 %v1029_v22 }
  0xf5   : > { %658 = vmatprep.subr.bf16.mxu1 %v1030_v23 }
  0xf8   : > { %659 = vmatpush1.bf16.msra.mxu1 %v1032_v24 }
  0xf9   : > { %660 = vmatprep.subr.bf16.mxu1 %v1033_v25 }
  0xfc   : > { %661 = vmatpush1.bf16.msra.mxu1 %v1035_v26 }
 0x1c4   : > { %v522_v29 = vpop.f32.mrb[0].mxu0 }
 0x1c5   : > { %v523_v31 = vadd.f32 %v522_v29, %v471_v28  ;;  %v919_v32 = vpop.f32.mrb[1].mxu0 }
 0x1c6   : > { %v525_v33 = vpop.f32.mrb[2].mxu0 }
 0x1c7   : > { %v535_v34 = vadd.f32 %v887_v30, %v523_v31  ;;  %v920_v35 = vpop.f32.mrb[3].mxu0 }
 0x1c9   : > { %v536_v36 = vmax.f32 %v535_v34, 0.0 }
 0x1cb   : > { %v553_v37 = vpack.c.bf16 %v536_v36, %v536_v36 }
 0x1cd   : > { %679 = vmatmul.mubr.bf16.vlgmr.msra.gmra.mrb[0].mxu1 %v553_v37 }
 0x2a0   : > { %v680_v45 = vpop.f32.mrb[0].mxu1 }
 0x2a1   : > { %v681_v46 = vadd.f32 %v680_v45, %v559_v43  ;;  %v682_v47 = vpop.f32.mrb[1].mxu1 }
 0x2a2   : > { %v683_v48 = vadd.f32 %v682_v47, %v563_v44  ;;  %v684_v49 = vpop.f32.mrb[2].mxu1 }
 0x2a3   : > { %1038 = vtanh.f32 %v681_v46  ;;  %v685_v50 = vpop.f32.mrb[3].mxu1 }
 0x2a4   : > { %1040 = vtanh.f32 %v683_v48 }
 0x2ad   : > { %v1039_v51 = vpop.eup %1038 }
 0x2ae   : > { %v1041_v52 = vpop.eup %1040  ;;  %v689_v53 = vmul.f32 2.0, %v1039_v51 }
 0x2af   : > { %v690_v54 = vmul.f32 2.0, %v1041_v52 }
 0x2b0   : > { %691 = vst [vmem:[%s457_s27] sm:$0xff] %v689_v53 }
 0x2b1   : > { %692 = vst [vmem:[%s457_s27 + $0x8] sm:$0xff] %v690_v54 }
 0x2b2   : > { %1231 = shalt.err (!%p1228_p2)
}
 0x2b3   : > { %s1232_s23 = scalar_lea.hbm %s1662_s4, 256  ;;  %s1236_s0 = scalar_lea.hbm %s1768_s16, 1024 }
 0x2b4   : > { %p1233_p7 = scmp.ne.s32.totalorder %s1662_s4, %s1232_s23  ;;  %p1237_p10 = scmp.lt.u32.totalorder %s1662_s4, %s1768_s16 }
 0x2b5   : > { %p1238_p0 = scmp.lt.u32.totalorder %s1236_s0, %s1232_s23  ;;  %p1240_p9 = scmp.lt.u32.totalorder %s1232_s23, %s1662_s4 }
 0x2b6   : > { %p1234_p5 = pnand %p1233_p7, %p1769_p4 }
 0x2b7   : > { %p1239_p12 = por %p1238_p0, %p1237_p10 }
 0x2b8   : > { %p1235_p11 = pneg %p1234_p5 }
 0x2b9   : > { %p1241_p6 = por %p1240_p9, %p1239_p12 }
 0x2bb   : > { %p1242_p3 = pnand %p1241_p6, %p1235_p11 }
 0x2bd   : > { %1245 = shalt.err (!%p1242_p3)
}
 0x2be   : > { %937 = dma.vmem_to_hbm [thread:$0]  (%p1769_p4), %s1664_s26, 256, %s1662_s4, %s694_s14  }
 0x2bf PF: > { %s1770_s11 = sld [smem:[#allocation20_spill]]  ;;  %s1771_s21 = sld [smem:[#allocation21_spill]] }
 0x2c0   : > { %p968_p13 = scmp.ge.s32.totalorder %s1300_s30, 2 }
 0x2c5   : > { %s720_s19 = sand.u32 1, %s1770_s11   ;;  %p1772_p8 = scmp.ne.s32.totalorder %s1771_s21, 0 }
 0x2c6   : > { %s721_s8 = scalar_lea.sflag [#allocation4], %s720_s19 }
 0x2c7   : > { %p960_p1 = pnand %p968_p13, %p1772_p8 }
 0x2c9   : > { %1283 = dma.done.wait (!%p960_p1), %s721_s8, 256  }
 0x2ca   : > { %1285 = vsyncadd (!%p960_p1), %s721_s8, 4294967040  ;;  %s1773_s30 = sld [smem:[#allocation22_spill]]  ;;  %s1774_s20 = sld [smem:[#allocation23_spill]] }
 0x2cb   : > { %s1775_s27 = smov %s1292_s28  ;;  %s1776_s28 = smov %s1296_s29 }
 0x2d0   : > { %p28_p2 = scmp.ge.s32.totalorder %s1773_s30, 6   ;;  %s1777_s29 = smov %s1774_s20 }
 0x2d2   :  { %30 = sbr.rel (!%p28_p2) target bundleno = 16 (0x10), region = 142 }
 0x2d9   :  { %726 = vsyncpa [#allocation3], 1 }
 0x2da   :  { %728 = vsyncpa [#allocation3 + $0x1], 1 }
 0x2db   :  { %729 = vsyncpa [#allocation6], 1 }
 0x2dc   :  { %731 = vsyncpa [#allocation6 + $0x1], 1 }
 0x2dd   :  { %732 = vsyncpa [#allocation9], 1 }
 0x2de   :  { %734 = vsyncpa [#allocation9 + $0x1], 1 }
 0x2df   :  { %735 = vsyncpa [#allocation12], 1 }
 0x2e0   :  { %736 = vsyncpa [#allocation4], 1 }
 0x2e1   :  { %738 = vsyncpa [#allocation4 + $0x1], 1 }

</bundles_post_ra>
